<compile_context>
chip_gen: v6e
topology: v6e:2x2x1
jax: 0.10.0
libtpu: 0.0.40
codegen_flags: <defaults>
</compile_context>

<pallas_src>
from functools import partial

import jax
import jax.numpy as jnp
from jax.experimental import pallas as pl
from jax.experimental.pallas import tpu as pltpu

_LANE_CAP = 2048            # max lane width (elements) of the flattened view
_SPLIT_THRESHOLD = 2 << 20  # above this many bytes, force >=2 row blocks (v7x megacore)


def _identity_kernel(x_ref, o_ref):
    # Hot path: pass-through of the current VMEM tile.
    o_ref[...] = x_ref[...]


def _round_up(x, m):
    return ((x + m - 1) // m) * m


def _round_down(x, m):
    return (x // m) * m


def _vmem_capacity_bytes():
    try:
        return int(pltpu.get_tpu_info().vmem_capacity_bytes)
    except Exception:
        return 64 << 20     # conservative fallback: v7x per-TensorCore VMEM


def _copy_call(x2d, block_shape, index_map, grid, vmem_limit):
    return pl.pallas_call(
        _identity_kernel,
        out_shape=jax.ShapeDtypeStruct(x2d.shape, x2d.dtype),
        grid_spec=pltpu.PrefetchScalarGridSpec(
            num_scalar_prefetch=0,
            grid=grid,
            in_specs=[pl.BlockSpec(block_shape, index_map)],
            out_specs=pl.BlockSpec(block_shape, index_map),
        ),
        # Output aliases the input HBM buffer: no new output allocation; with a
        # donated caller buffer the identity becomes an in-place pass-through.
        input_output_aliases={0: 0},
        compiler_params=pltpu.CompilerParams(
            dimension_semantics=("parallel",),
            vmem_limit_bytes=int(vmem_limit),
        ),
    )(x2d)


def _pallas_identity_copy_rows(x2d):
    """Row-tiled copy of a lane-dense 2D view (C is a multiple of 128, C <= 2048)."""
    R, C = x2d.shape
    itemsize = jnp.dtype(x2d.dtype).itemsize
    sub_min = max(8, 32 // itemsize)            # dtype-aware sublane packing
    total_bytes = R * C * itemsize

    vmem_cap = _vmem_capacity_bytes()
    # Per-tile budget scales with chip VMEM: ~8 MiB on v5e/v6e, ~4 MiB on v7x.
    per_buf = min(vmem_cap // 16, 16 << 20)

    row_bytes = _round_up(C, 128) * itemsize
    rows_budget = max(sub_min, _round_down(per_buf // row_bytes, sub_min))

    if R <= rows_budget and total_bytes <= _SPLIT_THRESHOLD:
        tile_r = R                       # small tensor: single full-extent block
    elif R <= 2 * sub_min:
        tile_r = R                       # too few rows to split further
    else:
        # Keep at least 2 row blocks so both v7x TensorCores get work.
        half = max(sub_min, _round_down(R // 2, sub_min))
        tile_r = min(rows_budget, half)

    grid = (pl.cdiv(R, tile_r),)
    tile_bytes = _round_up(tile_r, sub_min) * _round_up(C, 128) * itemsize
    # 2x in + 2x out double-buffers + headroom; floor above v5e's 16 MiB scoped
    # default, capped at physical VMEM (64 MiB on v7x, 128 MiB on v5e/v6e).
    vmem_limit = min(vmem_cap, max(32 << 20, 4 * tile_bytes + (4 << 20)))

    return _copy_call(x2d, (tile_r, C), lambda i: (i, 0), grid, vmem_limit)


def _pallas_identity_copy_ragged(x2d):
    # TODO(synk): ragged (size % 128 != 0) tensors use a single-sublane (1, n)
    # view; a lane-dense bulk + <128-element tail split would restore sublane
    # density but needs a second store path / concat.
    _, C = x2d.shape
    itemsize = jnp.dtype(x2d.dtype).itemsize
    vmem_cap = _vmem_capacity_bytes()
    per_buf = min(vmem_cap // 16, 16 << 20)

    # (1, tile_c) blocks are sublane-padded to 8 rows in VMEM; budget for it.
    if 8 * _round_up(C, 128) * itemsize <= per_buf:
        tile_c = C                                   # full extent: exempt from %128
    else:
        tile_c = max(128, _round_down(per_buf // (8 * itemsize), 128))

    grid = (pl.cdiv(C, tile_c),)
    tile_bytes = 8 * _round_up(tile_c, 128) * itemsize
    vmem_limit = min(vmem_cap, max(32 << 20, 4 * tile_bytes + (4 << 20)))
    return _copy_call(x2d, (1, tile_c), lambda j: (0, j), grid, vmem_limit)


@partial(jax.jit, donate_argnums=(0,))
def abstract_model_forward(x):
    """Pallas 'forward' for AbstractModel: identity pass-through.

    The tensor is flattened (inside jit) to a lane-dense 2D view with no
    padding, copied through VMEM in large contiguous row tiles, and reshaped
    back.  The input buffer is donated and aliased to the output, so no new
    HBM output buffer is allocated.
    """
    if x.size == 0:
        return x
    orig_shape = x.shape
    n = int(x.size)

    if n % 128 == 0:
        # Lane-dense flatten: last dim is a large multiple of 128 (no padding).
        lane = 128
        while lane * 2 <= _LANE_CAP and n % (lane * 2) == 0:
            lane *= 2
        out2d = _pallas_identity_copy_rows(x.reshape(n // lane, lane))
    else:
        out2d = _pallas_identity_copy_ragged(x.reshape(1, n))
    return out2d.reshape(orig_shape)


class AbstractModelPallas:
    """Mirror of the PyTorch AbstractModel's host-side behavior."""

    def __init__(self, *model_and_opts):
        from collections.abc import Iterable
        for model_and_opt in model_and_opts:
            if not (model_and_opt is None or isinstance(model_and_opt, Iterable)):
                raise Exception(
                    "model_and_opt arg should be None or iterable objects")
        self.optimizer_list = []

    def forward(self, x):
        # Abstract in the reference; here: Pallas identity pass-through.
        # NOTE: the argument's buffer is donated (aliased to the output).
        return abstract_model_forward(x)

    def get_loss_value(self, x, y, *args, **kwargs):
        raise NotImplementedError  # abstract in the reference module

    def get_all_optimizers_state_dicts(self):
        return [opt for opt in self.optimizer_list]  # no torch optimizers here


if __name__ == "__main__":
    key = jax.random.PRNGKey(0)
    # Small NCHW input consistent with typical usage: batch=2, channels=4, 16x16.
    x = jax.random.normal(key, (2, 4, 16, 16), dtype=jnp.float32)
    xb = x.astype(jnp.bfloat16)

    # Host-side reference copies: forward() donates its argument's buffer.
    x_np = jax.device_get(x)
    xb_np = jax.device_get(xb)

    model = AbstractModelPallas(None, [])

    y = jax.block_until_ready(model.forward(x))           # f32 path (donates x)
    assert y.shape == tuple(x_np.shape) and y.dtype == jnp.float32
    assert bool(jnp.array_equal(y, jnp.asarray(x_np))), "identity forward mismatch (f32)"

    yb = jax.block_until_ready(model.forward(xb))         # bf16 tiling path (donates xb)
    assert yb.shape == tuple(xb_np.shape) and yb.dtype == jnp.bfloat16
    assert bool(jnp.array_equal(yb, jnp.asarray(xb_np))), "identity forward mismatch (bf16)"

    print("KERNEL_OK")
</pallas_src>

<mosaic_0001>
module attributes {stable_mosaic.version = 11 : i64} {
  func.func @_identity_kernel(%arg0: i32, %arg1: memref<1x2048xf32, #tpu.memory_space<vmem>>, %arg2: memref<1x2048xf32, #tpu.memory_space<vmem>>) attributes {dimension_semantics = [#tpu.dimension_semantics<parallel>], iteration_bounds = array<i64: 1>, scalar_prefetch = 0 : i64, scratch_operands = 0 : i64, tpu.core_type = #tpu.core_type<tc>, window_params = [{transform_indices = @transform_0, window_bounds = array<i64: 1, 2048>}, {transform_indices = @transform_1, window_bounds = array<i64: 1, 2048>}]} {
    %c0 = arith.constant 0 : index
    %c0_0 = arith.constant 0 : index
    %0 = vector.load %arg1[%c0, %c0_0] : memref<1x2048xf32, #tpu.memory_space<vmem>>, vector<1x2048xf32>
    %c0_1 = arith.constant 0 : index
    %c0_2 = arith.constant 0 : index
    %1 = vector.load %arg2[%c0_1, %c0_2] : memref<1x2048xf32, #tpu.memory_space<vmem>>, vector<1x2048xf32>
    tpu.vector_store %arg2[%c0_1, %c0_2], %0 {strides = array<i32>} : memref<1x2048xf32, #tpu.memory_space<vmem>>, vector<1x2048xf32>,
    return
  }
  func.func @transform_0(%arg0: i32) -> (i32, i32) {
    %c0_i32 = arith.constant 0 : i32
    %c0_i32_0 = arith.constant 0 : i32
    return %arg0, %c0_i32 : i32, i32
  }
  func.func @transform_1(%arg0: i32) -> (i32, i32) {
    %c0_i32 = arith.constant 0 : i32
    %c0_i32_0 = arith.constant 0 : i32
    return %arg0, %c0_i32 : i32, i32
  }
}

</mosaic_0001>

<bundles_post_ra>
// kernel: abstract_model_forward.1
= control target key start
LH: loop header
LB: loop body
LE: loop exit
PB: predicated region body
PF: predicated region fallthrough
CT: control target
= control target key end

     0   :  { %s38_s0 = inlined_call_operand.vmem [shape: f32[1,2048], index: 0, kind: input, shape index: {}, may-alias: {0,1}]   ;;  %s39_s1 = inlined_call_operand.vmem [shape: f32[1,2048], index: 1, kind: output, shape index: {}, may-alias: {0,1}]  }
   0x1   :  { %v8_v0 = vld [vmem:[%s38_s0] sm:$0xff]  ;;  %v9_v1 = vld [vmem:[%s38_s0 + $0x8] sm:$0xff] }
   0x2   :  { %10 = vst [vmem:[%s39_s1] sm:$0xff] %v8_v0  ;;  %11 = vst [vmem:[%s39_s1 + $0x8] sm:$0xff] %v9_v1 }

</bundles_post_ra>
